<compile_context>
chip_gen: v7x
topology: tpu7x:2x2x1
jax: 0.10.0
libtpu: 0.0.40
codegen_flags: <defaults>
</compile_context>

<pallas_src>
import functools

import jax
import jax.numpy as jnp
from jax.experimental import pallas as pl
from jax.experimental.pallas import tpu as pltpu


def _round_up(x, m):
    return ((x + m - 1) // m) * m


def _sublane_align(*dtypes):
    """Sublane multiple required by the most tightly packed dtype involved."""
    align = 8
    for dt in dtypes:
        isz = jnp.dtype(dt).itemsize
        if isz < 4:
            align = max(align, 32 // max(isz, 1))   # bf16 -> 16, int8/fp8 -> 32
    return align


def _tpu_core_and_vmem():
    """(TensorCores per device, physical VMEM bytes per core), with safe fallbacks."""
    num_cores = 1
    vmem_bytes = 64 * 1024 * 1024                     # conservative (v7x-sized) default
    try:
        info = pltpu.get_tpu_info()
        v = getattr(info, "vmem_capacity_bytes", None)
        if v is not None:
            vmem_bytes = int(v)
        for attr in ("num_cores", "num_tensorcores", "tensorcores_per_chip", "core_count"):
            c = getattr(info, attr, None)
            if c is not None:
                num_cores = max(1, int(c))
                break
    except Exception:
        pass
    if num_cores == 1:
        try:
            kind = jax.devices()[0].device_kind.lower()
            if "v7" in kind:
                num_cores = 2                         # v7x: 2 TensorCores per chip
        except Exception:
            pass
    return num_cores, vmem_bytes


def _shifted_and_lse(logits, exp_in_bf16):
    """Numerically-stable shifted logits and log-sum-exp (per row)."""
    m = jnp.max(logits, axis=-1, keepdims=True)
    shifted = logits - m
    if exp_in_bf16:
        # EUP runs bf16 ~2x f32 on v6e/v7x; shifted <= 0 so the range is safe.
        e = jnp.exp(shifted.astype(jnp.bfloat16)).astype(jnp.float32)
    else:
        e = jnp.exp(shifted)
    lse = jnp.log(jnp.sum(e, axis=-1, keepdims=True))
    return shifted, lse


def _accumulate(acc_ref, loss_rows, *, tile_n, total_n):
    """Add per-row losses into the resident accumulator.

    The row mask (iota + compare + select) only runs on tiles that can contain padded
    boundary rows or phantom (clamped chunk-padding) rows; interior tiles do a plain add.
    """
    t = pl.program_id(0) * pl.num_programs(1) + pl.program_id(1)    # global tile index
    needs_mask = (t + 1) * tile_n > total_n

    @pl.when(needs_mask)
    def _():
        rows = t * tile_n + jax.lax.broadcasted_iota(jnp.int32, loss_rows.shape, 0)
        acc_ref[...] += jnp.where(rows < total_n, loss_rows, 0.0)

    @pl.when(jnp.logical_not(needs_mask))
    def _():
        acc_ref[...] += loss_rows


def _finalize(out_ref, acc_ref, *, total_n):
    """On the last inner step: one cross-row reduce, one divide, one store."""
    @pl.when(pl.program_id(1) == pl.num_programs(1) - 1)
    def _():
        partial = jnp.sum(acc_ref[...], keepdims=True)              # (1, 1)
        out_ref[...] = (partial * jnp.float32(1.0 / total_n)).reshape(1, 1, 1)


def _ce_int_kernel(pred_ref, gt_ref, out_ref, acc_ref, *,
                   n_classes, smoothing, total_n, tile_n, exp_in_bf16):
    """gt.ndim == 1 path: integer labels; smoothed one-hot folded via the lse identity.

    target_c = off + (on-off)*[c==label]  with  sum_c target_c == 1, so
    loss_row = lse - off*rowsum(shifted) - (on-off)*shifted[label].
    """
    @pl.when(pl.program_id(1) == 0)
    def _():
        acc_ref[...] = jnp.zeros_like(acc_ref)

    logits = pred_ref[...].astype(jnp.float32)                      # (TN, C)
    shifted, lse = _shifted_and_lse(logits, exp_in_bf16)
    classes = jax.lax.broadcasted_iota(jnp.int32, shifted.shape, 1)
    labels = gt_ref[...]                                            # (TN, 1) int32
    on_val = jnp.float32(1.0 - smoothing)
    off_val = jnp.float32(smoothing / (n_classes - 1))
    row_sum = jnp.sum(shifted, axis=-1, keepdims=True)              # (TN, 1)
    lbl_sum = jnp.sum(jnp.where(classes == labels, shifted, 0.0),
                      axis=-1, keepdims=True)                       # shifted[label]
    loss_rows = lse - off_val * row_sum - (on_val - off_val) * lbl_sum

    _accumulate(acc_ref, loss_rows, tile_n=tile_n, total_n=total_n)
    _finalize(out_ref, acc_ref, total_n=total_n)


def _ce_soft_kernel(pred_ref, gt_ref, out_ref, acc_ref, *,
                    smoothing, total_n, tile_n, exp_in_bf16):
    """gt.ndim == 2 path: soft targets, smoothing mass spread over zero entries.

    target = gt*(1-s) + is_zero*likelihood; via the lse identity
    loss_row = lse*sum(target) - (1-s)*rowsum(gt*shifted) - likelihood*rowsum_zero(shifted).
    """
    @pl.when(pl.program_id(1) == 0)
    def _():
        acc_ref[...] = jnp.zeros_like(acc_ref)

    logits = pred_ref[...].astype(jnp.float32)                      # (TN, C)
    shifted, lse = _shifted_and_lse(logits, exp_in_bf16)
    gt = gt_ref[...].astype(jnp.float32)                            # (TN, C)
    is_zero = gt == 0.0
    n_zero = jnp.sum(jnp.where(is_zero, 1.0, 0.0), axis=-1, keepdims=True)
    # Guarded (rows with no zero entries get zero smoothing mass, matching the previous
    # where-selected kernel semantics and avoiding 0*inf NaNs).
    likelihood = jnp.where(n_zero > 0.0,
                           jnp.float32(smoothing) / jnp.maximum(n_zero, 1.0),
                           0.0)
    one_m_s = jnp.float32(1.0 - smoothing)
    w_sum = one_m_s * jnp.sum(gt, axis=-1, keepdims=True) + likelihood * n_zero
    dot_gt = jnp.sum(gt * shifted, axis=-1, keepdims=True)
    dot_zero = jnp.sum(jnp.where(is_zero, shifted, 0.0), axis=-1, keepdims=True)
    loss_rows = lse * w_sum - one_m_s * dot_gt - likelihood * dot_zero

    _accumulate(acc_ref, loss_rows, tile_n=tile_n, total_n=total_n)
    _finalize(out_ref, acc_ref, total_n=total_n)


def classification_loss(pred, gt, n_classes, smoothing=0.0, tile_n=None,
                        n_chunks=None, vmem_budget_bytes=None, exp_in_bf16=False):
    """Pallas equivalent of ClassificationLoss.forward(pred, gt)."""
    assert 0 <= smoothing <= 1, "The argument `smoothing` must be between 0 and 1!"
    N, C = pred.shape
    assert C == n_classes
    pred_bytes = jnp.dtype(pred.dtype).itemsize
    c_pad = _round_up(C, 128)

    num_cores, vmem_physical = _tpu_core_and_vmem()
    if vmem_physical >= 100 * 1024 * 1024:            # 128 MiB parts (v5e / v6e)
        default_budget = 40 * 1024 * 1024
        vmem_limit = 64 * 1024 * 1024
    else:                                              # 64 MiB per-core parts (v7x)
        default_budget = 20 * 1024 * 1024
        vmem_limit = 40 * 1024 * 1024
    if vmem_budget_bytes is None:
        vmem_budget_bytes = default_budget

    if gt.ndim == 1:
        gt_in = gt.reshape(N, 1).astype(jnp.int32)     # tiny; no pred copy
        gt_row_bytes = 128 * 4                         # (TN,1) i32 lane-pads
        gt_hbm_bytes = N * 4
        kernel_fn = _ce_int_kernel
        extra_kwargs = dict(n_classes=n_classes)
        gt_block = lambda tn: (tn, 1)
        align = _sublane_align(pred.dtype, jnp.int32)
    elif gt.ndim == 2:
        assert gt.shape == (N, C)
        gt_in = gt                                     # cast to f32 in-kernel
        gt_row_bytes = c_pad * jnp.dtype(gt.dtype).itemsize
        gt_hbm_bytes = N * C * jnp.dtype(gt.dtype).itemsize
        kernel_fn = _ce_soft_kernel
        extra_kwargs = {}
        gt_block = lambda tn: (tn, C)
        align = _sublane_align(pred.dtype, gt.dtype)
    else:
        raise ValueError("gt must be 1-D (class indices) or 2-D (soft targets)")

    if tile_n is None:
        # 2x double-buffered inputs + the (tile_n, 1) f32 accumulator scratch per row.
        per_row = 2 * (c_pad * pred_bytes + gt_row_bytes) + 128 * 4
        tile_n = (vmem_budget_bytes // per_row) // align * align
        tile_n = max(align, min(tile_n, 4096, _round_up(N, align)))
    assert tile_n % align == 0, f"tile_n must be a multiple of {align} for these dtypes"

    num_tiles = pl.cdiv(N, tile_n)
    if n_chunks is None:
        n_chunks = min(num_cores, num_tiles)           # 1 on single-TC parts
    n_chunks = max(1, min(n_chunks, num_tiles))
    tiles_per_chunk = pl.cdiv(num_tiles, n_chunks)

    def row_block(c, i):
        # Clamp phantom tiles (chunk padding) onto the last real tile; the kernel masks
        # them out by global row index, so they contribute zero.
        return (jnp.minimum(c * tiles_per_chunk + i, num_tiles - 1), 0)

    kernel = functools.partial(kernel_fn, smoothing=float(smoothing),
                               total_n=N, tile_n=tile_n, exp_in_bf16=exp_in_bf16,
                               **extra_kwargs)

    cost = pl.CostEstimate(
        flops=5 * N * C,
        transcendentals=N * C + N,
        bytes_accessed=N * C * pred_bytes + gt_hbm_bytes + 4 * n_chunks,
    )

    def _run(semantics):
        return pl.pallas_call(
            kernel,
            out_shape=jax.ShapeDtypeStruct((n_chunks, 1, 1), jnp.float32),
            grid=(n_chunks, tiles_per_chunk),
            in_specs=[pl.BlockSpec((tile_n, C), row_block),
                      pl.BlockSpec(gt_block(tile_n), row_block)],
            out_specs=pl.BlockSpec((1, 1, 1), lambda c, i: (c, 0, 0)),
            scratch_shapes=[pltpu.VMEM((tile_n, 1), jnp.float32)],
            compiler_params=pltpu.CompilerParams(
                dimension_semantics=semantics,
                vmem_limit_bytes=vmem_limit),
            cost_estimate=cost,
        )(pred, gt_in)

    if n_chunks > 1 and num_cores > 1:
        # Shard the chunk axis across the TensorCores (v7x); fall back if rejected.
        try:
            out = _run((pltpu.CORE_PARALLEL, pltpu.ARBITRARY))
        except Exception:
            out = _run(("parallel", "arbitrary"))
    else:
        out = _run(("parallel", "arbitrary"))

    # Per-chunk partial means (each already divided by N) -> total mean.
    return jnp.sum(out)


def _reference_loss(pred, gt, n_classes, smoothing):
    """Pure-JAX mirror of the PyTorch forward, for verification."""
    logp = jax.nn.log_softmax(pred.astype(jnp.float32), axis=-1)
    if gt.ndim == 1:
        new_gt = jnp.full_like(logp, smoothing / (n_classes - 1))
        new_gt = new_gt.at[jnp.arange(pred.shape[0]), gt].set(1.0 - smoothing)
    else:
        gt = gt.astype(jnp.float32)
        is_zero = gt == 0
        likelihood = smoothing / (gt.shape[1] - jnp.sum(~is_zero, axis=1))
        new_gt = gt * (1.0 - smoothing) + is_zero * likelihood[:, None]
    return jnp.mean(-jnp.sum(new_gt * logp, axis=-1))


if __name__ == "__main__":
    key = jax.random.PRNGKey(0)
    smoothing = 0.1
    N, C = 16, 32
    k1, k2, k3 = jax.random.split(key, 3)
    pred = jax.random.normal(k1, (N, C), dtype=jnp.float32)
    gt_int = jax.random.randint(k2, (N,), 0, C, dtype=jnp.int32)

    # Case 1: integer labels, f32 preds, default (large) tile.
    loss_int = classification_loss(pred, gt_int, n_classes=C, smoothing=smoothing)
    jax.block_until_ready(loss_int)
    ref_int = _reference_loss(pred, gt_int, C, smoothing)
    assert jnp.allclose(loss_int, ref_int, atol=1e-5, rtol=1e-5), (loss_int, ref_int)

    # Case 2: soft (one-hot) targets.
    gt_soft = jax.nn.one_hot(gt_int, C, dtype=jnp.float32)
    loss_soft = classification_loss(pred, gt_soft, n_classes=C, smoothing=smoothing)
    jax.block_until_ready(loss_soft)
    ref_soft = _reference_loss(pred, gt_soft, C, smoothing)
    assert jnp.allclose(loss_soft, ref_soft, atol=1e-5, rtol=1e-5), (loss_soft, ref_soft)

    # Case 3: bf16 preds DMA'd directly (no wrapper-side f32 copy), f32 math in-kernel.
    pred_bf16 = pred.astype(jnp.bfloat16)
    loss_bf16 = classification_loss(pred_bf16, gt_int, n_classes=C, smoothing=smoothing)
    jax.block_until_ready(loss_bf16)
    ref_bf16 = _reference_loss(pred_bf16.astype(jnp.float32), gt_int, C, smoothing)
    assert jnp.allclose(loss_bf16, ref_bf16, atol=1e-4, rtol=1e-4), (loss_bf16, ref_bf16)

    # Case 4: ragged N + forced small tile -> masked partial tail tile.
    N2 = 13
    pred2 = jax.random.normal(k3, (N2, C), dtype=jnp.float32)
    gt2 = jax.random.randint(jax.random.PRNGKey(7), (N2,), 0, C, dtype=jnp.int32)
    loss2 = classification_loss(pred2, gt2, n_classes=C, smoothing=smoothing, tile_n=8)
    jax.block_until_ready(loss2)
    ref2 = _reference_loss(pred2, gt2, C, smoothing)
    assert jnp.allclose(loss2, ref2, atol=1e-5, rtol=1e-5), (loss2, ref2)

    # Case 5: odd tile count + forced 2-chunk split -> phantom (clamped + masked) tile.
    N3 = 24
    pred3 = jax.random.normal(jax.random.PRNGKey(11), (N3, C), dtype=jnp.float32)
    gt3_soft = jax.nn.one_hot(
        jax.random.randint(jax.random.PRNGKey(12), (N3,), 0, C, dtype=jnp.int32),
        C, dtype=jnp.float32)
    loss3 = classification_loss(pred3, gt3_soft, n_classes=C, smoothing=smoothing,
                                tile_n=8, n_chunks=2)
    jax.block_until_ready(loss3)
    ref3 = _reference_loss(pred3, gt3_soft, C, smoothing)
    assert jnp.allclose(loss3, ref3, atol=1e-5, rtol=1e-5), (loss3, ref3)

    print("KERNEL_OK")
</pallas_src>

<mosaic_0001>
module attributes {stable_mosaic.version = 11 : i64} {
  func.func @_ce_int_kernel(%arg0: i32, %arg1: i32, %arg2: memref<16x32xf32, #tpu.memory_space<vmem>>, %arg3: memref<16x1xi32, #tpu.memory_space<vmem>>, %arg4: memref<1x1x1xf32, #tpu.memory_space<vmem>>, %arg5: memref<16x1xf32, #tpu.memory_space<vmem>>) attributes {dimension_semantics = [#tpu.dimension_semantics<parallel>, #tpu.dimension_semantics<arbitrary>], iteration_bounds = array<i64: 1, 1>, scalar_prefetch = 0 : i64, scratch_operands = 1 : i64, tpu.core_type = #tpu.core_type<tc>, window_params = [{transform_indices = @transform_0, window_bounds = array<i64: 16, 32>}, {transform_indices = @transform_1, window_bounds = array<i64: 16, 1>}, {transform_indices = @transform_2, window_bounds = array<i64: 1, 1, 1>}]} {
    %c0_i32 = arith.constant 0 : i32
    %0 = arith.cmpi eq, %arg1, %c0_i32 : i32
    %1 = arith.extui %0 : i1 to i32
    %c0_i32_0 = arith.constant 0 : i32
    %2 = arith.cmpi ne, %1, %c0_i32_0 : i32
    scf.if %2 {
      %cst_17 = arith.constant 0.000000e+00 : f32
      %42 = vector.broadcast %cst_17 : f32 to vector<16x1xf32>
      %c0_18 = arith.constant 0 : index
      %c0_19 = arith.constant 0 : index
      %43 = vector.load %arg5[%c0_18, %c0_19] : memref<16x1xf32, #tpu.memory_space<vmem>>, vector<16x1xf32>
      tpu.vector_store %arg5[%c0_18, %c0_19], %42 {strides = array<i32>} : memref<16x1xf32, #tpu.memory_space<vmem>>, vector<16x1xf32>,
    } else {
    }
    %c0 = arith.constant 0 : index
    %c0_1 = arith.constant 0 : index
    %3 = vector.load %arg2[%c0, %c0_1] : memref<16x32xf32, #tpu.memory_space<vmem>>, vector<16x32xf32>
    %cst = arith.constant dense<0xFF800000> : vector<16xf32>
    %4 = vector.multi_reduction <maximumf>, %3, %cst [1] : vector<16x32xf32> to vector<16xf32>
    %5 = vector.shape_cast %4 : vector<16xf32> to vector<16x1xf32>
    %6 = vector.broadcast %5 : vector<16x1xf32> to vector<16x32xf32>
    %7 = arith.subf %3, %6 : vector<16x32xf32>
    %8 = math.exp %7 : vector<16x32xf32>
    %cst_2 = arith.constant dense<0.000000e+00> : vector<16xf32>
    %9 = vector.multi_reduction <add>, %8, %cst_2 [1] : vector<16x32xf32> to vector<16xf32>
    %10 = vector.shape_cast %9 : vector<16xf32> to vector<16x1xf32>
    %11 = math.log %10 : vector<16x1xf32>
    %12 = tpu.iota {dimensions = array<i32: 1>} : vector<16x32xi32>
    %c0_3 = arith.constant 0 : index
    %c0_4 = arith.constant 0 : index
    %13 = vector.load %arg3[%c0_3, %c0_4] : memref<16x1xi32, #tpu.memory_space<vmem>>, vector<16x1xi32>
    %cst_5 = arith.constant dense<0.000000e+00> : vector<16xf32>
    %14 = vector.multi_reduction <add>, %7, %cst_5 [1] : vector<16x32xf32> to vector<16xf32>
    %15 = vector.shape_cast %14 : vector<16xf32> to vector<16x1xf32>
    %16 = vector.broadcast %13 : vector<16x1xi32> to vector<16x32xi32>
    %17 = arith.cmpi eq, %12, %16 : vector<16x32xi32>
    %cst_6 = arith.constant 0.000000e+00 : f32
    %18 = vector.broadcast %cst_6 : f32 to vector<16x32xf32>
    %19 = arith.select %17, %7, %18 : vector<16x32xi1>, vector<16x32xf32>
    %cst_7 = arith.constant dense<0.000000e+00> : vector<16xf32>
    %20 = vector.multi_reduction <add>, %19, %cst_7 [1] : vector<16x32xf32> to vector<16xf32>
    %21 = vector.shape_cast %20 : vector<16xf32> to vector<16x1xf32>
    %cst_8 = arith.constant 0.0032258064 : f32
    %22 = vector.broadcast %cst_8 : f32 to vector<16x1xf32>
    %23 = arith.mulf %22, %15 : vector<16x1xf32>
    %24 = arith.subf %11, %23 : vector<16x1xf32>
    %cst_9 = arith.constant 0.899999976 : f32
    %cst_10 = arith.constant 0.0032258064 : f32
    %25 = arith.subf %cst_9, %cst_10 : f32
    %26 = vector.broadcast %25 : f32 to vector<16x1xf32>
    %27 = arith.mulf %26, %21 : vector<16x1xf32>
    %28 = arith.subf %24, %27 : vector<16x1xf32>
    %c1_i32 = arith.constant 1 : i32
    %29 = arith.muli %arg0, %c1_i32 : i32
    %30 = arith.addi %29, %arg1 : i32
    %c1_i32_11 = arith.constant 1 : i32
    %31 = arith.addi %30, %c1_i32_11 : i32
    %c16_i32 = arith.constant 16 : i32
    %32 = arith.muli %31, %c16_i32 : i32
    %c16_i32_12 = arith.constant 16 : i32
    %33 = arith.cmpi sgt, %32, %c16_i32_12 : i32
    %34 = arith.extui %33 : i1 to i32
    %c0_i32_13 = arith.constant 0 : i32
    %35 = arith.cmpi ne, %34, %c0_i32_13 : i32
    scf.if %35 {
      %c16_i32_17 = arith.constant 16 : i32
      %42 = arith.muli %30, %c16_i32_17 : i32
      %43 = tpu.iota {dimensions = array<i32: 0>} : vector<16x1xi32>
      %44 = vector.broadcast %42 : i32 to vector<16x1xi32>
      %45 = arith.addi %44, %43 : vector<16x1xi32>
      %c0_18 = arith.constant 0 : index
      %c0_19 = arith.constant 0 : index
      %46 = vector.load %arg5[%c0_18, %c0_19] : memref<16x1xf32, #tpu.memory_space<vmem>>, vector<16x1xf32>
      %c16_i32_20 = arith.constant 16 : i32
      %47 = vector.broadcast %c16_i32_20 : i32 to vector<16x1xi32>
      %48 = arith.cmpi slt, %45, %47 : vector<16x1xi32>
      %cst_21 = arith.constant 0.000000e+00 : f32
      %49 = vector.broadcast %cst_21 : f32 to vector<16x1xf32>
      %50 = arith.select %48, %28, %49 : vector<16x1xi1>, vector<16x1xf32>
      %51 = arith.addf %46, %50 : vector<16x1xf32>
      %c0_22 = arith.constant 0 : index
      %c0_23 = arith.constant 0 : index
      %52 = vector.load %arg5[%c0_22, %c0_23] : memref<16x1xf32, #tpu.memory_space<vmem>>, vector<16x1xf32>
      tpu.vector_store %arg5[%c0_22, %c0_23], %51 {strides = array<i32>} : memref<16x1xf32, #tpu.memory_space<vmem>>, vector<16x1xf32>,
    } else {
    }
    %true = arith.constant true
    %36 = arith.xori %33, %true : i1
    %37 = arith.extui %36 : i1 to i32
    %c0_i32_14 = arith.constant 0 : i32
    %38 = arith.cmpi ne, %37, %c0_i32_14 : i32
    scf.if %38 {
      %c0_17 = arith.constant 0 : index
      %c0_18 = arith.constant 0 : index
      %42 = vector.load %arg5[%c0_17, %c0_18] : memref<16x1xf32, #tpu.memory_space<vmem>>, vector<16x1xf32>
      %43 = arith.addf %42, %28 : vector<16x1xf32>
      %c0_19 = arith.constant 0 : index
      %c0_20 = arith.constant 0 : index
      %44 = vector.load %arg5[%c0_19, %c0_20] : memref<16x1xf32, #tpu.memory_space<vmem>>, vector<16x1xf32>
      tpu.vector_store %arg5[%c0_19, %c0_20], %43 {strides = array<i32>} : memref<16x1xf32, #tpu.memory_space<vmem>>, vector<16x1xf32>,
    } else {
    }
    %c0_i32_15 = arith.constant 0 : i32
    %39 = arith.cmpi eq, %arg1, %c0_i32_15 : i32
    %40 = arith.extui %39 : i1 to i32
    %c0_i32_16 = arith.constant 0 : i32
    %41 = arith.cmpi ne, %40, %c0_i32_16 : i32
    scf.if %41 {
      %c0_17 = arith.constant 0 : index
      %c0_18 = arith.constant 0 : index
      %42 = vector.load %arg5[%c0_17, %c0_18] : memref<16x1xf32, #tpu.memory_space<vmem>>, vector<16x1xf32>
      %43 = vector.shape_cast %42 : vector<16x1xf32> to vector<1x16x1xf32>
      %cst_19 = arith.constant dense<0.000000e+00> : vector<1xf32>
      %44 = vector.multi_reduction <add>, %43, %cst_19 [1, 2] : vector<1x16x1xf32> to vector<1xf32>
      %45 = vector.shape_cast %44 : vector<1xf32> to vector<1x1x1xf32>
      %46 = vector.extract %45[0, 0, 0] : f32 from vector<1x1x1xf32>
      %47 = vector.broadcast %46 : f32 to vector<1x1xf32>
      %cst_20 = arith.constant 6.250000e-02 : f32
      %48 = vector.broadcast %cst_20 : f32 to vector<1x1xf32>
      %49 = arith.mulf %47, %48 : vector<1x1xf32>
      %50 = vector.shape_cast %49 : vector<1x1xf32> to vector<1x1x1xf32>
      %c0_21 = arith.constant 0 : index
      %c0_22 = arith.constant 0 : index
      %c0_23 = arith.constant 0 : index
      %51 = vector.load %arg4[%c0_21, %c0_22, %c0_23] : memref<1x1x1xf32, #tpu.memory_space<vmem>>, vector<1x1x1xf32>
      tpu.vector_store %arg4[%c0_21, %c0_22, %c0_23], %50 {strides = array<i32>} : memref<1x1x1xf32, #tpu.memory_space<vmem>>, vector<1x1x1xf32>,
    } else {
    }
    return
  }
  func.func @transform_0(%arg0: i32, %arg1: i32) -> (i32, i32) {
    %c1_i32 = arith.constant 1 : i32
    %0 = arith.muli %arg0, %c1_i32 : i32
    %1 = arith.addi %0, %arg1 : i32
    %c0_i32 = arith.constant 0 : i32
    %2 = arith.minsi %1, %c0_i32 : i32
    %c0_i32_0 = arith.constant 0 : i32
    %c0_i32_1 = arith.constant 0 : i32
    return %2, %c0_i32_0 : i32, i32
  }
  func.func @transform_1(%arg0: i32, %arg1: i32) -> (i32, i32) {
    %c1_i32 = arith.constant 1 : i32
    %0 = arith.muli %arg0, %c1_i32 : i32
    %1 = arith.addi %0, %arg1 : i32
    %c0_i32 = arith.constant 0 : i32
    %2 = arith.minsi %1, %c0_i32 : i32
    %c0_i32_0 = arith.constant 0 : i32
    %c0_i32_1 = arith.constant 0 : i32
    return %2, %c0_i32_0 : i32, i32
  }
  func.func @transform_2(%arg0: i32, %arg1: i32) -> (i32, i32, i32) {
    %c0_i32 = arith.constant 0 : i32
    %c0_i32_0 = arith.constant 0 : i32
    %c0_i32_1 = arith.constant 0 : i32
    return %arg0, %c0_i32, %c0_i32_0 : i32, i32, i32
  }
}

</mosaic_0001>

<bundles_post_ra>
// kernel: tpu_custom_call.1
= control target key start
LH: loop header
LB: loop body
LE: loop exit
PB: predicated region body
PF: predicated region fallthrough
CT: control target
= control target key end

     0   :  { %vm85_vm0 = vcmask 261120   ;;  %v265_v4 = vmov 0   ;;  %s321_s0 = inlined_call_operand.vmem [shape: f32[16,32], index: 0, kind: input, shape index: {}]   ;;  %s322_s1 = inlined_call_operand.vmem [shape: s32[16,1], index: 1, kind: input, shape index: {}]   ;;  %s323_s2 = inlined_call_operand.hbm [shape: f32[1,1,1], index: 2, kind: output, shape index: {}]  }
   0x1   :  { %v83_v0 = vld [vmem:[%s321_s0] sm:$0xff]  ;;  %v84_v1 = vld [vmem:[%s321_s0 + $0x8] sm:$0xff]  ;;  %231 = vset.pattern.permute.xlu1 %v265_v4  ;;  %232 = vset.pattern.permute.xlu0 %v265_v4 }
   0x2   :  { %v110_v2 = vld [vmem:[%s322_s1] sm:$0xff]  ;;  %v86_v3 = vsel %vm85_vm0, %v83_v0, -inf }
   0x3   :  { %7 = vsyncpa [#allocation4], 0  ;;  %87 = vmax.xlane.f32.xlu0 %v86_v3  ;;  %119 = vperm.xlu1 %231, %v110_v2   ;;  %v89_v5 = vsel %vm85_vm0, %v84_v1, -inf  ;;  %v111_v6 = vld [vmem:[%s322_s1 + $0x8] sm:$0xff]  ;;  %v108_v13 = vlaneseq  ;;  %vm80_vm3 = vcmask 7168   ;;  %v266_v27 = vmov 0.0  }
   0x4   :  { %81 = vst.msk [vmem:[#allocation2] sm:$0xff] %vm80_vm3, %v266_v27  ;;  %82 = vst.msk [vmem:[#allocation2 + $0x8] sm:$0xff] %vm80_vm3, %v266_v27  ;;  %s267_s0 = smov [#allocation3]   ;;  %vm198_vm4 = vcmask 0  }
   0x5   :  { %v109_v17 = vand.u32 127, %v108_v13  ;;  %s206_s1 = sshll.u32 %s267_s0, 4  ;;  %s207_s1 = int_to_ptr.vmem [resolvable:$true] %s206_s1 }
   0x6   :  { %s241_s18 = scalar_lea.vmem %s207_s1, 16  ;;  %s245_s19 = scalar_lea.vmem %s207_s1, 32 }
   0x7   :  { %90 = vmax.xlane.f32.xlu0 %v89_v5  ;;  %122 = vperm.xlu1 %231, %v111_v6   ;;  %p242_p0 = scmp.ne.s32.totalorder %s207_s1, %s241_s18  ;;  %p246_p1 = scmp.lt.s32.totalorder %s207_s1, %s207_s1 }
   0x8   :  { %p247_p2 = scmp.lt.s32.totalorder %s245_s19, %s241_s18 }
   0xa   :  { %p248_p3 = por %p247_p2, %p246_p1 }
   0xb   :  { %v171_v39 = vld [vmem:[#allocation2] sm:$0xff]  ;;  %v172_v47 = vld [vmem:[#allocation2 + $0x8] sm:$0xff] }
   0xc   :  { %p249_p4 = pnand %p248_p3, %p242_p0 }
  0x82   :  { %v120_v16 = vpop.permute.xlu1 %119 }
  0x83   :  { %vm124_vm1 = vcmp.eq.s32.totalorder %v109_v17, %v120_v16 }
  0x86   :  { %v123_v21 = vpop.permute.xlu1 %122 }
  0x87   :  { %vm125_vm2 = vcmp.eq.s32.totalorder %v109_v17, %v123_v21 }
  0x90   :  { %v88_v7 = vpop.xlane.xlu0 %87 }
  0x91   :  { %v92_v8 = vsub.f32 %v83_v0, %v88_v7 }
  0x93   :  { %v94_v9 = vmul.f32 1.442695, %v92_v8  ;;  %v112_v19 = vsel %vm85_vm0, %v92_v8, 0.0  ;;  %v126_v23 = vsel %vm124_vm1, %v92_v8, 0.0 }
  0x94   :  { %v91_v10 = vpop.xlane.xlu0 %90  ;;  %v128_v24 = vsel %vm85_vm0, %v126_v23, 0.0 }
  0x95   :  { %233 = vpow2.f32 %v94_v9  ;;  %v93_v11 = vsub.f32 %v84_v1, %v91_v10 }
  0x97   :  { %v96_v12 = vmul.f32 1.442695, %v93_v11  ;;  %v115_v22 = vsel %vm85_vm0, %v93_v11, 0.0  ;;  %v127_v25 = vsel %vm125_vm2, %v93_v11, 0.0 }
  0x98   :  { %v131_v26 = vsel %vm85_vm0, %v127_v25, 0.0 }
  0x99   :  { %235 = vpow2.f32 %v96_v12 }
  0x9f   :  { %v234_v14 = vpop.eup %233 }
  0xa0   :  { %v98_v15 = vsel %vm85_vm0, %v234_v14, 0.0 }
  0xa1   :  { %99 = vadd.xlane.f32.xlu0 %v98_v15 }
  0xa3   :  { %v236_v18 = vpop.eup %235 }
  0xa4   :  { %v101_v20 = vsel %vm85_vm0, %v236_v18, 0.0 }
  0xa5   :  { %113 = vadd.xlane.f32.xlu0 %v112_v19  ;;  %102 = vadd.xlane.f32.xlu1 %v101_v20 }
  0xa9   :  { %116 = vadd.xlane.f32.xlu0 %v115_v22 }
  0xad   :  { %129 = vadd.xlane.f32.xlu0 %v128_v24 }
  0xb1   :  { %132 = vadd.xlane.f32.xlu0 %v131_v26 }
 0x12e   :  { %v100_v28 = vpop.xlane.xlu0 %99 }
 0x12f   :  { %237 = vlog2.f32 %v100_v28 }
 0x132   :  { %v103_v29 = vpop.xlane.xlu1 %102  ;;  %v114_v30 = vpop.xlane.xlu0 %113 }
 0x133   :  { %239 = vlog2.f32 %v103_v29  ;;  %v134_v34 = vmul.f32 0.0032258064, %v114_v30 }
 0x136   :  { %v117_v31 = vpop.xlane.xlu0 %116 }
 0x137   :  { %v135_v41 = vmul.f32 0.0032258064, %v117_v31 }
 0x139   :  { %v238_v32 = vpop.eup %237 }
 0x13a   :  { %v105_v33 = vmul.f32 0.6931472, %v238_v32  ;;  %v130_v35 = vpop.xlane.xlu0 %129 }
 0x13b   :  { %v138_v36 = vmul.f32 0.8967742, %v130_v35 }
 0x13c   :  { %v136_v37 = vsub.f32 %v105_v33, %v134_v34 }
 0x13d   :  { %v240_v38 = vpop.eup %239 }
 0x13e   :  { %v107_v40 = vmul.f32 0.6931472, %v240_v38  ;;  %v140_v42 = vsub.f32 %v136_v37, %v138_v36  ;;  %v133_v43 = vpop.xlane.xlu0 %132 }
 0x13f   :  { %v139_v44 = vmul.f32 0.8967742, %v133_v43 }
 0x140   :  { %v137_v45 = vsub.f32 %v107_v40, %v135_v41  ;;  %v173_v46 = vadd.f32 %v171_v39, %v140_v42 }
 0x142   :  { %176 = vst.msk [vmem:[#allocation2] sm:$0xff] %vm80_vm3, %v173_v46  ;;  %v141_v48 = vsub.f32 %v137_v45, %v139_v44 }
 0x144   :  { %v174_v49 = vadd.f32 %v172_v47, %v141_v48 }
 0x146   :  { %177 = vst.msk [vmem:[#allocation2 + $0x8] sm:$0xff] %vm80_vm3, %v174_v49 }
 0x149   :  { %v181_v50 = vld [vmem:[#allocation2] sm:$0xff] }
 0x14a   :  { %v184_v52 = vsel %vm80_vm3, %v181_v50, 0.0 }
 0x14d   :  { %v182_v51 = vld [vmem:[#allocation2 + $0x8] sm:$0xff] }
 0x14e   :  { %v185_v53 = vsel %vm80_vm3, %v182_v51, 0.0 }
 0x14f   :  { %v186_v54 = vadd.f32 %v185_v53, %v184_v52 }
 0x151   :  { %187 = vadd.xlane.f32.xlu0 %v186_v54 }
 0x1de   :  { %v188_v55 = vpop.xlane.xlu0 %187 }
 0x1df   :  { %v189_v56 = vrot.slane %v188_v55, 4 }
 0x1e1   :  { %v190_v57 = vadd.f32 %v189_v56, %v188_v55 }
 0x1e3   :  { %v191_v58 = vrot.slane %v190_v57, 2 }
 0x1e5   :  { %v192_v59 = vadd.f32 %v191_v58, %v190_v57 }
 0x1e7   :  { %v193_v60 = vrot.slane %v192_v59, 1 }
 0x1e9   :  { %v194_v61 = vadd.f32 %v193_v60, %v192_v59 }
 0x1eb   :  { %226 = vpush %v194_v61 }
 0x21c   :  { %s227_s17 = spop %226 }
 0x21d   :  { %v196_v62 = vstv %s227_s17 }
 0x21e   :  { %v197_v63 = vmul.f32 0.0625, %v196_v62 }
 0x220   :  { %199 = vst.msk [vmem:[#allocation3] sm:$0x1] %vm198_vm4, %v197_v63 }
 0x221   :  { %252 = shalt.err (!%p249_p4)
}
 0x222   :  { %s253_s22 = scalar_lea.hbm %s323_s2, 16 }
 0x223   :  { %p254_p5 = scmp.ne.s32.totalorder %s323_s2, %s253_s22  ;;  %p257_p6 = scmp.lt.u32.totalorder %s253_s22, %s323_s2 }
 0x225   :  { %p259_p7 = pnand %p257_p6, %p254_p5 }
 0x227   :  { %262 = shalt.err (!%p259_p7)
}
 0x228   :  { %209 = dma.vmem_to_hbm [thread:$0]  %s207_s1, 16, %s323_s2, [#allocation4]  }
 0x229   :  { %263 = dma.done.wait [#allocation4], 16  }
 0x22a   :  { %264 = vsyncadd [#allocation4], 4294967280 }
 0x22b   :  { %213 = vsyncpa [#allocation4], 1 }

</bundles_post_ra>
